<compile_context>
chip_gen: v7x
topology: tpu7x:2x2x1
jax: 0.10.0
libtpu: 0.0.40
codegen_flags: <defaults>
</compile_context>

<pallas_src>
import functools

import jax
import jax.numpy as jnp
from jax import lax
from jax.experimental import pallas as pl
from jax.experimental.pallas import tpu as pltpu


# ---------------------------------------------------------------------------
# Shared helpers (traced inside kernels)
# ---------------------------------------------------------------------------
def _conv_block(x, w, *, length, k_size, c_in, dilation):
    """Dilated 'same' Conv1d taps for one block.

    x: (NB, C_in, L_pad) f32 (already zero padded), w: (C_out, C_in*K) f32.
    Returns (NB, C_out, L) f32, WITHOUT the conv bias.
    """
    nb = x.shape[0]
    c_out = w.shape[0]
    acc = jnp.zeros((nb, c_out, length), jnp.float32)
    # K*C_in is a small fixed constant (12 here): a static unrolled VPU broadcast-MAC
    # beats the MXU at these channel counts and keeps the vector-extended slot free.
    for k in range(k_size):
        xs = x[:, :, k * dilation:k * dilation + length]          # (NB, C_in, L)
        for i in range(c_in):
            wc = w[:, i * k_size + k:i * k_size + k + 1]          # (C_out, 1)
            acc = acc + wc[None] * xs[:, i:i + 1, :]              # (NB, C_out, L)
    return acc


def _block_stats(acc):
    """Per-channel [sum, sum-of-squares] over (batch-block, length): two (C_out,1)."""
    s = jnp.sum(jnp.sum(acc, axis=2, keepdims=True), axis=0)            # (C_out, 1)
    ss = jnp.sum(jnp.sum(acc * acc, axis=2, keepdims=True), axis=0)     # (C_out, 1)
    return s, ss


def _pick_batch_block(n, bytes_per_sample, target_bytes=2 << 20):
    """Largest divisor of n with per-step bytes <= target, keeping >=2 grid steps
    whenever n >= 2 (keeps both v7x TensorCores busy and the pipeline overlapped)."""
    limit = n // 2 if n >= 2 else 1
    best = 1
    for d in range(1, max(limit, 1) + 1):
        if n % d == 0 and d * bytes_per_sample <= target_bytes:
            best = d
    return best


# ---------------------------------------------------------------------------
# Fused single-pass kernel: conv + stats (phase 0), BN apply (phase 1)
# ---------------------------------------------------------------------------
def _fused_kernel(x_ref, w_ref, b_ref, g_ref, beta_ref, o_ref,
                  y_vmem, sum_vmem, sq_vmem, scale_vmem, shift_vmem,
                  *, length, k_size, c_in, dilation, count, eps):
    phase = pl.program_id(0)
    blk = pl.program_id(1)
    nb = o_ref.shape[0]
    row0 = blk * nb
    if nb > 1:
        row0 = pl.multiple_of(row0, nb)

    @pl.when(phase == 0)
    def _conv_phase():
        acc = _conv_block(x_ref[...].astype(jnp.float32),
                          w_ref[...].astype(jnp.float32),
                          length=length, k_size=k_size, c_in=c_in, dilation=dilation)
        # Bias-centered partial stats (mitigates E[y^2]-E[y]^2 cancellation).
        s, ss = _block_stats(acc)

        @pl.when(blk == 0)
        def _():
            sum_vmem[...] = s
            sq_vmem[...] = ss

        @pl.when(blk > 0)
        def _():
            sum_vmem[...] = sum_vmem[...] + s
            sq_vmem[...] = sq_vmem[...] + ss

        # Conv output (with bias) stays on-chip; it never round-trips to HBM.
        y_vmem[pl.ds(row0, nb)] = acc + b_ref[...][None]

    @pl.when(phase == 1)
    def _bn_phase():
        @pl.when(blk == 0)
        def _():
            inv_n = 1.0 / count
            m0 = sum_vmem[...] * inv_n                   # mean of bias-centered y
            var = sq_vmem[...] * inv_n - m0 * m0         # biased (training) variance
            sc = g_ref[...] * lax.rsqrt(var + eps)
            scale_vmem[...] = sc
            shift_vmem[...] = beta_ref[...] - (m0 + b_ref[...]) * sc

        y = y_vmem[pl.ds(row0, nb)]                      # (NB, C_out, L) f32
        o_ref[...] = (y * scale_vmem[...][None]
                      + shift_vmem[...][None]).astype(o_ref.dtype)


def _fused_forward(x_pad, w2, b, g, bt, *, N, C_in, C_out, L, L_pad, K,
                   dilation, eps, nb, out_dtype):
    n_blocks = N // nb
    kern = functools.partial(_fused_kernel, length=L, k_size=K, c_in=C_in,
                             dilation=dilation, count=float(N * L), eps=eps)
    x_bytes = nb * C_in * L_pad * x_pad.dtype.itemsize
    o_bytes = nb * C_out * L * jnp.dtype(out_dtype).itemsize
    y_bytes = N * C_out * L * 4
    need = 2 * (x_bytes + o_bytes) + y_bytes + (1 << 20)
    vmem_limit = int(min(64 << 20, max(16 << 20, 2 * need)))

    return pl.pallas_call(
        kern,
        grid=(2, n_blocks),
        in_specs=[
            # Phase 1 does not need x; park its index on block 0 (no per-step refetch).
            pl.BlockSpec((nb, C_in, L_pad), lambda p, n: ((1 - p) * n, 0, 0)),
            pl.BlockSpec((C_out, C_in * K), lambda p, n: (0, 0)),
            pl.BlockSpec((C_out, 1), lambda p, n: (0, 0)),   # conv bias
            pl.BlockSpec((C_out, 1), lambda p, n: (0, 0)),   # gamma
            pl.BlockSpec((C_out, 1), lambda p, n: (0, 0)),   # beta
        ],
        # Output block index only advances during phase 1 (phase 0 pins block 0), so
        # every block is DMA'd to HBM exactly once, after its phase-1 write.
        out_specs=pl.BlockSpec((nb, C_out, L), lambda p, n: (p * n, 0, 0)),
        out_shape=jax.ShapeDtypeStruct((N, C_out, L), out_dtype),
        scratch_shapes=[
            pltpu.VMEM((N, C_out, L), jnp.float32),   # whole-batch conv output
            pltpu.VMEM((C_out, 1), jnp.float32),      # running sum   (bias-centered)
            pltpu.VMEM((C_out, 1), jnp.float32),      # running sumsq (bias-centered)
            pltpu.VMEM((C_out, 1), jnp.float32),      # fused scale
            pltpu.VMEM((C_out, 1), jnp.float32),      # fused shift
        ],
        compiler_params=pltpu.CompilerParams(
            # Whole-batch stats + shared y scratch require sequential execution.
            dimension_semantics=("arbitrary", "arbitrary"),
            vmem_limit_bytes=vmem_limit),
    )(x_pad, w2, b, g, bt)


# ---------------------------------------------------------------------------
# Two-pass fallback (large activations): conv+stats pass, tiny JAX reduce, apply pass
# ---------------------------------------------------------------------------
def _conv_stats_kernel(x_ref, w_ref, b_ref, y_ref, stats_ref,
                       *, length, k_size, c_in, dilation):
    acc = _conv_block(x_ref[...].astype(jnp.float32),
                      w_ref[...].astype(jnp.float32),
                      length=length, k_size=k_size, c_in=c_in, dilation=dilation)
    s, ss = _block_stats(acc)                 # bias-centered partials, one per block
    stats_ref[:, 0:1] = s
    stats_ref[:, 1:2] = ss
    y_ref[...] = (acc + b_ref[...][None]).astype(y_ref.dtype)


def _bn_apply_kernel(y_ref, scale_ref, shift_ref, o_ref):
    y = y_ref[...].astype(jnp.float32)
    o_ref[...] = (y * scale_ref[...][None] + shift_ref[...][None]).astype(o_ref.dtype)


def _two_pass_forward(x_pad, w2, b, g, bt, *, N, C_in, C_out, L, L_pad, K,
                      dilation, eps, nb, out_dtype):
    n_blocks = N // nb
    # bf16 callers keep a bf16 intermediate (halves dominant y write+read traffic);
    # statistics are taken from the f32 accumulator before the downcast.
    y_dtype = jnp.bfloat16 if out_dtype == jnp.bfloat16 else jnp.float32

    x_bytes = nb * C_in * L_pad * x_pad.dtype.itemsize
    y_bytes = nb * C_out * L * jnp.dtype(y_dtype).itemsize
    o_bytes = nb * C_out * L * jnp.dtype(out_dtype).itemsize

    conv_kern = functools.partial(_conv_stats_kernel, length=L, k_size=K,
                                  c_in=C_in, dilation=dilation)
    p1_limit = int(min(64 << 20, max(16 << 20, 4 * (x_bytes + y_bytes) + (2 << 20))))
    y, stats = pl.pallas_call(
        conv_kern,
        grid=(n_blocks,),
        in_specs=[
            pl.BlockSpec((nb, C_in, L_pad), lambda n: (n, 0, 0)),
            pl.BlockSpec((C_out, C_in * K), lambda n: (0, 0)),
            pl.BlockSpec((C_out, 1), lambda n: (0, 0)),
        ],
        out_specs=[
            pl.BlockSpec((nb, C_out, L), lambda n: (n, 0, 0)),
            pl.BlockSpec((None, C_out, 2), lambda n: (n, 0, 0)),   # one partial / block
        ],
        out_shape=(jax.ShapeDtypeStruct((N, C_out, L), y_dtype),
                   jax.ShapeDtypeStruct((n_blocks, C_out, 2), jnp.float32)),
        compiler_params=pltpu.CompilerParams(
            dimension_semantics=("parallel",), vmem_limit_bytes=p1_limit),
    )(x_pad, w2, b)

    # Tiny hoisted reduce (n_blocks*C_out*2 floats): build the fused per-channel
    # affine once instead of recomputing it in every pass-2 grid step.
    totals = jnp.sum(stats, axis=0)                       # (C_out, 2)
    inv_n = 1.0 / float(N * L)
    mean0 = totals[:, 0:1] * inv_n                        # mean of bias-centered y
    var = totals[:, 1:2] * inv_n - mean0 * mean0          # biased (training) variance
    scale = g * lax.rsqrt(var + eps)                      # (C_out, 1)
    shift = bt - (mean0 + b) * scale                      # (C_out, 1)

    p2_limit = int(min(64 << 20, max(16 << 20, 4 * (y_bytes + o_bytes) + (2 << 20))))
    # Reuse y's HBM buffer as the output when dtypes match (no 2nd activation buffer).
    aliases = {0: 0} if y_dtype == out_dtype else {}
    out = pl.pallas_call(
        _bn_apply_kernel,
        grid=(n_blocks,),
        in_specs=[
            pl.BlockSpec((nb, C_out, L), lambda n: (n, 0, 0)),
            pl.BlockSpec((C_out, 1), lambda n: (0, 0)),
            pl.BlockSpec((C_out, 1), lambda n: (0, 0)),
        ],
        out_specs=pl.BlockSpec((nb, C_out, L), lambda n: (n, 0, 0)),
        out_shape=jax.ShapeDtypeStruct((N, C_out, L), out_dtype),
        input_output_aliases=aliases,
        compiler_params=pltpu.CompilerParams(
            dimension_semantics=("parallel",), vmem_limit_bytes=p2_limit),
    )(y, scale, shift)
    return out


# ---------------------------------------------------------------------------
# Public wrapper
# ---------------------------------------------------------------------------
def sampadding_conv1d_bn(x_ncl, weight_oik, bias, gamma, beta,
                         *, dilation=4, eps=1e-5, fuse=None):
    """x_ncl: (N, C_in, L) as in PyTorch; weight_oik: (C_out, C_in, K). -> (N, C_out, L)."""
    N, C_in, L = x_ncl.shape
    C_out, _, K = weight_oik.shape

    # Conv1d padding='same' with dilation: total = dilation*(K-1) (always even here).
    total_pad = dilation * (K - 1)
    pad_l = total_pad // 2
    pad_r = total_pad - pad_l
    L_pad = L + total_pad

    x_pad = jnp.pad(x_ncl, ((0, 0), (0, 0), (pad_l, pad_r)))      # (N, C_in, L_pad)
    w2 = weight_oik.reshape(C_out, C_in * K)                      # column j = i*K + k
    b = bias.reshape(C_out, 1).astype(jnp.float32)
    g = gamma.reshape(C_out, 1).astype(jnp.float32)
    bt = beta.reshape(C_out, 1).astype(jnp.float32)
    out_dtype = x_ncl.dtype

    per_sample_bytes = (C_in * L_pad + 2 * C_out * L) * 4
    nb = _pick_batch_block(N, per_sample_bytes)

    if fuse is None:
        # Keep the whole-batch f32 conv output on-chip when it comfortably fits VMEM
        # (24 MiB budget leaves headroom on v7x's 64 MiB per-TC VMEM).
        fuse = (N * C_out * L * 4) <= (24 << 20)

    common = dict(N=N, C_in=C_in, C_out=C_out, L=L, L_pad=L_pad, K=K,
                  dilation=dilation, eps=eps, nb=nb, out_dtype=out_dtype)
    if fuse:
        return _fused_forward(x_pad, w2, b, g, bt, **common)
    return _two_pass_forward(x_pad, w2, b, g, bt, **common)


# ---------------------------------------------------------------------------
# Reference + self-test
# ---------------------------------------------------------------------------
def _reference(x_ncl, weight_oik, bias, gamma, beta, *, dilation=4, eps=1e-5):
    K = weight_oik.shape[-1]
    total_pad = dilation * (K - 1)
    pad_l = total_pad // 2
    y = lax.conv_general_dilated(
        x_ncl.astype(jnp.float32), weight_oik.astype(jnp.float32),
        window_strides=(1,), padding=[(pad_l, total_pad - pad_l)],
        rhs_dilation=(dilation,), dimension_numbers=('NCH', 'OIH', 'NCH'))
    y = y + bias[None, :, None]
    mean = jnp.mean(y, axis=(0, 2), keepdims=True)
    var = jnp.mean((y - mean) ** 2, axis=(0, 2), keepdims=True)
    return (y - mean) / jnp.sqrt(var + eps) * gamma[None, :, None] + beta[None, :, None]


if __name__ == "__main__":
    # Small shapes consistent with the module: x is (N, C_in, L).
    N, C_in, C_out, L, K = 2, 4, 8, 16, 3
    dilation, eps = 4, 1e-5

    key = jax.random.PRNGKey(0)
    kx, kw, kb = jax.random.split(key, 3)

    x = jax.random.normal(kx, (N, C_in, L), dtype=jnp.float32)

    # Deterministic parameter init mimicking PyTorch defaults.
    fan_in = C_in * K
    bound = 1.0 / float(fan_in) ** 0.5
    weight = jax.random.uniform(kw, (C_out, C_in, K), jnp.float32, -bound, bound)
    bias = jax.random.uniform(kb, (C_out,), jnp.float32, -bound, bound)
    gamma = jnp.ones((C_out,), jnp.float32)   # BatchNorm1d weight init
    beta = jnp.zeros((C_out,), jnp.float32)   # BatchNorm1d bias init

    ref = _reference(x, weight, bias, gamma, beta, dilation=dilation, eps=eps)

    # Exercise both the fused (y kept in VMEM) path and the two-pass fallback.
    for fuse in (True, False):
        fwd = jax.jit(functools.partial(sampadding_conv1d_bn,
                                        dilation=dilation, eps=eps, fuse=fuse))
        out = jax.block_until_ready(fwd(x, weight, bias, gamma, beta))
        assert out.shape == (N, C_out, L)
        err = float(jnp.max(jnp.abs(out - ref)))
        assert jnp.allclose(out, ref, atol=1e-4, rtol=1e-4), \
            f"fuse={fuse}: max err {err}"

    print("KERNEL_OK")
</pallas_src>

<mosaic_0001>
module attributes {stable_mosaic.version = 11 : i64} {
  func.func @_fused_kernel(%arg0: i32, %arg1: i32, %arg2: memref<1x4x24xf32, #tpu.memory_space<vmem>>, %arg3: memref<8x12xf32, #tpu.memory_space<vmem>>, %arg4: memref<8x1xf32, #tpu.memory_space<vmem>>, %arg5: memref<8x1xf32, #tpu.memory_space<vmem>>, %arg6: memref<8x1xf32, #tpu.memory_space<vmem>>, %arg7: memref<1x8x16xf32, #tpu.memory_space<vmem>>, %arg8: memref<2x8x16xf32, #tpu.memory_space<vmem>>, %arg9: memref<8x1xf32, #tpu.memory_space<vmem>>, %arg10: memref<8x1xf32, #tpu.memory_space<vmem>>, %arg11: memref<8x1xf32, #tpu.memory_space<vmem>>, %arg12: memref<8x1xf32, #tpu.memory_space<vmem>>) attributes {dimension_semantics = [#tpu.dimension_semantics<arbitrary>, #tpu.dimension_semantics<arbitrary>], iteration_bounds = array<i64: 2, 2>, scalar_prefetch = 0 : i64, scratch_operands = 5 : i64, tpu.core_type = #tpu.core_type<tc>, window_params = [{transform_indices = @transform_0, window_bounds = array<i64: 1, 4, 24>}, {pipeline_mode = #tpu.pipeline_mode<synchronous>, transform_indices = @transform_1, window_bounds = array<i64: 8, 12>}, {pipeline_mode = #tpu.pipeline_mode<synchronous>, transform_indices = @transform_2, window_bounds = array<i64: 8, 1>}, {pipeline_mode = #tpu.pipeline_mode<synchronous>, transform_indices = @transform_3, window_bounds = array<i64: 8, 1>}, {pipeline_mode = #tpu.pipeline_mode<synchronous>, transform_indices = @transform_4, window_bounds = array<i64: 8, 1>}, {transform_indices = @transform_5, window_bounds = array<i64: 1, 8, 16>}]} {
    %c1_i32 = arith.constant 1 : i32
    %0 = arith.muli %arg1, %c1_i32 : i32
    %c0_i32 = arith.constant 0 : i32
    %1 = arith.cmpi eq, %arg0, %c0_i32 : i32
    %2 = arith.extui %1 : i1 to i32
    %c0_i32_0 = arith.constant 0 : i32
    %3 = arith.cmpi ne, %2, %c0_i32_0 : i32
    scf.if %3 {
      %c0 = arith.constant 0 : index
      %c0_3 = arith.constant 0 : index
      %c0_4 = arith.constant 0 : index
      %7 = vector.load %arg2[%c0, %c0_3, %c0_4] : memref<1x4x24xf32, #tpu.memory_space<vmem>>, vector<1x4x24xf32>
      %c0_5 = arith.constant 0 : index
      %c0_6 = arith.constant 0 : index
      %8 = vector.load %arg3[%c0_5, %c0_6] : memref<8x12xf32, #tpu.memory_space<vmem>>, vector<8x12xf32>
      %cst = arith.constant 0.000000e+00 : f32
      %9 = vector.broadcast %cst : f32 to vector<1x8x16xf32>
      %10 = vector.extract_strided_slice %7 {offsets = [0, 0, 0], sizes = [1, 4, 16], strides = [1, 1, 1]} : vector<1x4x24xf32> to vector<1x4x16xf32>
      %11 = vector.extract_strided_slice %8 {offsets = [0, 0], sizes = [8, 1], strides = [1, 1]} : vector<8x12xf32> to vector<8x1xf32>
      %12 = vector.shape_cast %11 : vector<8x1xf32> to vector<1x8x1xf32>
      %13 = vector.extract_strided_slice %10 {offsets = [0, 0, 0], sizes = [1, 1, 16], strides = [1, 1, 1]} : vector<1x4x16xf32> to vector<1x1x16xf32>
      %14 = vector.broadcast %12 : vector<1x8x1xf32> to vector<1x8x16xf32>
      %15 = vector.broadcast %13 : vector<1x1x16xf32> to vector<1x8x16xf32>
      %16 = arith.mulf %14, %15 : vector<1x8x16xf32>
      %17 = arith.addf %9, %16 : vector<1x8x16xf32>
      %18 = vector.extract_strided_slice %8 {offsets = [0, 3], sizes = [8, 1], strides = [1, 1]} : vector<8x12xf32> to vector<8x1xf32>
      %19 = vector.shape_cast %18 : vector<8x1xf32> to vector<1x8x1xf32>
      %20 = vector.extract_strided_slice %10 {offsets = [0, 1, 0], sizes = [1, 1, 16], strides = [1, 1, 1]} : vector<1x4x16xf32> to vector<1x1x16xf32>
      %21 = vector.broadcast %19 : vector<1x8x1xf32> to vector<1x8x16xf32>
      %22 = vector.broadcast %20 : vector<1x1x16xf32> to vector<1x8x16xf32>
      %23 = arith.mulf %21, %22 : vector<1x8x16xf32>
      %24 = arith.addf %17, %23 : vector<1x8x16xf32>
      %25 = vector.extract_strided_slice %8 {offsets = [0, 6], sizes = [8, 1], strides = [1, 1]} : vector<8x12xf32> to vector<8x1xf32>
      %26 = vector.shape_cast %25 : vector<8x1xf32> to vector<1x8x1xf32>
      %27 = vector.extract_strided_slice %10 {offsets = [0, 2, 0], sizes = [1, 1, 16], strides = [1, 1, 1]} : vector<1x4x16xf32> to vector<1x1x16xf32>
      %28 = vector.broadcast %26 : vector<1x8x1xf32> to vector<1x8x16xf32>
      %29 = vector.broadcast %27 : vector<1x1x16xf32> to vector<1x8x16xf32>
      %30 = arith.mulf %28, %29 : vector<1x8x16xf32>
      %31 = arith.addf %24, %30 : vector<1x8x16xf32>
      %32 = vector.extract_strided_slice %8 {offsets = [0, 9], sizes = [8, 1], strides = [1, 1]} : vector<8x12xf32> to vector<8x1xf32>
      %33 = vector.shape_cast %32 : vector<8x1xf32> to vector<1x8x1xf32>
      %34 = vector.extract_strided_slice %10 {offsets = [0, 3, 0], sizes = [1, 1, 16], strides = [1, 1, 1]} : vector<1x4x16xf32> to vector<1x1x16xf32>
      %35 = vector.broadcast %33 : vector<1x8x1xf32> to vector<1x8x16xf32>
      %36 = vector.broadcast %34 : vector<1x1x16xf32> to vector<1x8x16xf32>
      %37 = arith.mulf %35, %36 : vector<1x8x16xf32>
      %38 = arith.addf %31, %37 : vector<1x8x16xf32>
      %39 = vector.extract_strided_slice %7 {offsets = [0, 0, 4], sizes = [1, 4, 16], strides = [1, 1, 1]} : vector<1x4x24xf32> to vector<1x4x16xf32>
      %40 = vector.extract_strided_slice %8 {offsets = [0, 1], sizes = [8, 1], strides = [1, 1]} : vector<8x12xf32> to vector<8x1xf32>
      %41 = vector.shape_cast %40 : vector<8x1xf32> to vector<1x8x1xf32>
      %42 = vector.extract_strided_slice %39 {offsets = [0, 0, 0], sizes = [1, 1, 16], strides = [1, 1, 1]} : vector<1x4x16xf32> to vector<1x1x16xf32>
      %43 = vector.broadcast %41 : vector<1x8x1xf32> to vector<1x8x16xf32>
      %44 = vector.broadcast %42 : vector<1x1x16xf32> to vector<1x8x16xf32>
      %45 = arith.mulf %43, %44 : vector<1x8x16xf32>
      %46 = arith.addf %38, %45 : vector<1x8x16xf32>
      %47 = vector.extract_strided_slice %8 {offsets = [0, 4], sizes = [8, 1], strides = [1, 1]} : vector<8x12xf32> to vector<8x1xf32>
      %48 = vector.shape_cast %47 : vector<8x1xf32> to vector<1x8x1xf32>
      %49 = vector.extract_strided_slice %39 {offsets = [0, 1, 0], sizes = [1, 1, 16], strides = [1, 1, 1]} : vector<1x4x16xf32> to vector<1x1x16xf32>
      %50 = vector.broadcast %48 : vector<1x8x1xf32> to vector<1x8x16xf32>
      %51 = vector.broadcast %49 : vector<1x1x16xf32> to vector<1x8x16xf32>
      %52 = arith.mulf %50, %51 : vector<1x8x16xf32>
      %53 = arith.addf %46, %52 : vector<1x8x16xf32>
      %54 = vector.extract_strided_slice %8 {offsets = [0, 7], sizes = [8, 1], strides = [1, 1]} : vector<8x12xf32> to vector<8x1xf32>
      %55 = vector.shape_cast %54 : vector<8x1xf32> to vector<1x8x1xf32>
      %56 = vector.extract_strided_slice %39 {offsets = [0, 2, 0], sizes = [1, 1, 16], strides = [1, 1, 1]} : vector<1x4x16xf32> to vector<1x1x16xf32>
      %57 = vector.broadcast %55 : vector<1x8x1xf32> to vector<1x8x16xf32>
      %58 = vector.broadcast %56 : vector<1x1x16xf32> to vector<1x8x16xf32>
      %59 = arith.mulf %57, %58 : vector<1x8x16xf32>
      %60 = arith.addf %53, %59 : vector<1x8x16xf32>
      %61 = vector.extract_strided_slice %8 {offsets = [0, 10], sizes = [8, 1], strides = [1, 1]} : vector<8x12xf32> to vector<8x1xf32>
      %62 = vector.shape_cast %61 : vector<8x1xf32> to vector<1x8x1xf32>
      %63 = vector.extract_strided_slice %39 {offsets = [0, 3, 0], sizes = [1, 1, 16], strides = [1, 1, 1]} : vector<1x4x16xf32> to vector<1x1x16xf32>
      %64 = vector.broadcast %62 : vector<1x8x1xf32> to vector<1x8x16xf32>
      %65 = vector.broadcast %63 : vector<1x1x16xf32> to vector<1x8x16xf32>
      %66 = arith.mulf %64, %65 : vector<1x8x16xf32>
      %67 = arith.addf %60, %66 : vector<1x8x16xf32>
      %68 = vector.extract_strided_slice %7 {offsets = [0, 0, 8], sizes = [1, 4, 16], strides = [1, 1, 1]} : vector<1x4x24xf32> to vector<1x4x16xf32>
      %69 = vector.extract_strided_slice %8 {offsets = [0, 2], sizes = [8, 1], strides = [1, 1]} : vector<8x12xf32> to vector<8x1xf32>
      %70 = vector.shape_cast %69 : vector<8x1xf32> to vector<1x8x1xf32>
      %71 = vector.extract_strided_slice %68 {offsets = [0, 0, 0], sizes = [1, 1, 16], strides = [1, 1, 1]} : vector<1x4x16xf32> to vector<1x1x16xf32>
      %72 = vector.broadcast %70 : vector<1x8x1xf32> to vector<1x8x16xf32>
      %73 = vector.broadcast %71 : vector<1x1x16xf32> to vector<1x8x16xf32>
      %74 = arith.mulf %72, %73 : vector<1x8x16xf32>
      %75 = arith.addf %67, %74 : vector<1x8x16xf32>
      %76 = vector.extract_strided_slice %8 {offsets = [0, 5], sizes = [8, 1], strides = [1, 1]} : vector<8x12xf32> to vector<8x1xf32>
      %77 = vector.shape_cast %76 : vector<8x1xf32> to vector<1x8x1xf32>
      %78 = vector.extract_strided_slice %68 {offsets = [0, 1, 0], sizes = [1, 1, 16], strides = [1, 1, 1]} : vector<1x4x16xf32> to vector<1x1x16xf32>
      %79 = vector.broadcast %77 : vector<1x8x1xf32> to vector<1x8x16xf32>
      %80 = vector.broadcast %78 : vector<1x1x16xf32> to vector<1x8x16xf32>
      %81 = arith.mulf %79, %80 : vector<1x8x16xf32>
      %82 = arith.addf %75, %81 : vector<1x8x16xf32>
      %83 = vector.extract_strided_slice %8 {offsets = [0, 8], sizes = [8, 1], strides = [1, 1]} : vector<8x12xf32> to vector<8x1xf32>
      %84 = vector.shape_cast %83 : vector<8x1xf32> to vector<1x8x1xf32>
      %85 = vector.extract_strided_slice %68 {offsets = [0, 2, 0], sizes = [1, 1, 16], strides = [1, 1, 1]} : vector<1x4x16xf32> to vector<1x1x16xf32>
      %86 = vector.broadcast %84 : vector<1x8x1xf32> to vector<1x8x16xf32>
      %87 = vector.broadcast %85 : vector<1x1x16xf32> to vector<1x8x16xf32>
      %88 = arith.mulf %86, %87 : vector<1x8x16xf32>
      %89 = arith.addf %82, %88 : vector<1x8x16xf32>
      %90 = vector.extract_strided_slice %8 {offsets = [0, 11], sizes = [8, 1], strides = [1, 1]} : vector<8x12xf32> to vector<8x1xf32>
      %91 = vector.shape_cast %90 : vector<8x1xf32> to vector<1x8x1xf32>
      %92 = vector.extract_strided_slice %68 {offsets = [0, 3, 0], sizes = [1, 1, 16], strides = [1, 1, 1]} : vector<1x4x16xf32> to vector<1x1x16xf32>
      %93 = vector.broadcast %91 : vector<1x8x1xf32> to vector<1x8x16xf32>
      %94 = vector.broadcast %92 : vector<1x1x16xf32> to vector<1x8x16xf32>
      %95 = arith.mulf %93, %94 : vector<1x8x16xf32>
      %96 = arith.addf %89, %95 : vector<1x8x16xf32>
      %cst_7 = arith.constant dense<0.000000e+00> : vector<1x8xf32>
      %97 = vector.multi_reduction <add>, %96, %cst_7 [2] : vector<1x8x16xf32> to vector<1x8xf32>
      %98 = vector.shape_cast %97 : vector<1x8xf32> to vector<1x8x1xf32>
      %cst_8 = arith.constant dense<0.000000e+00> : vector<8x1xf32>
      %99 = vector.multi_reduction <add>, %98, %cst_8 [0] : vector<1x8x1xf32> to vector<8x1xf32>
      %100 = arith.mulf %96, %96 : vector<1x8x16xf32>
      %cst_9 = arith.constant dense<0.000000e+00> : vector<1x8xf32>
      %101 = vector.multi_reduction <add>, %100, %cst_9 [2] : vector<1x8x16xf32> to vector<1x8xf32>
      %102 = vector.shape_cast %101 : vector<1x8xf32> to vector<1x8x1xf32>
      %cst_10 = arith.constant dense<0.000000e+00> : vector<8x1xf32>
      %103 = vector.multi_reduction <add>, %102, %cst_10 [0] : vector<1x8x1xf32> to vector<8x1xf32>
      %c0_i32_11 = arith.constant 0 : i32
      %104 = arith.cmpi eq, %arg1, %c0_i32_11 : i32
      %105 = arith.extui %104 : i1 to i32
      %c0_i32_12 = arith.constant 0 : i32
      %106 = arith.cmpi ne, %105, %c0_i32_12 : i32
      scf.if %106 {
        %c0_19 = arith.constant 0 : index
        %c0_20 = arith.constant 0 : index
        %116 = vector.load %arg9[%c0_19, %c0_20] : memref<8x1xf32, #tpu.memory_space<vmem>>, vector<8x1xf32>
        tpu.vector_store %arg9[%c0_19, %c0_20], %99 {strides = array<i32>} : memref<8x1xf32, #tpu.memory_space<vmem>>, vector<8x1xf32>,
        %c0_21 = arith.constant 0 : index
        %c0_22 = arith.constant 0 : index
        %117 = vector.load %arg10[%c0_21, %c0_22] : memref<8x1xf32, #tpu.memory_space<vmem>>, vector<8x1xf32>
        tpu.vector_store %arg10[%c0_21, %c0_22], %103 {strides = array<i32>} : memref<8x1xf32, #tpu.memory_space<vmem>>, vector<8x1xf32>,
      } else {
      }
      %c0_i32_13 = arith.constant 0 : i32
      %107 = arith.cmpi sgt, %arg1, %c0_i32_13 : i32
      %108 = arith.extui %107 : i1 to i32
      %c0_i32_14 = arith.constant 0 : i32
      %109 = arith.cmpi ne, %108, %c0_i32_14 : i32
      scf.if %109 {
        %c0_19 = arith.constant 0 : index
        %c0_20 = arith.constant 0 : index
        %116 = vector.load %arg9[%c0_19, %c0_20] : memref<8x1xf32, #tpu.memory_space<vmem>>, vector<8x1xf32>
        %117 = arith.addf %116, %99 : vector<8x1xf32>
        %c0_21 = arith.constant 0 : index
        %c0_22 = arith.constant 0 : index
        %118 = vector.load %arg9[%c0_21, %c0_22] : memref<8x1xf32, #tpu.memory_space<vmem>>, vector<8x1xf32>
        tpu.vector_store %arg9[%c0_21, %c0_22], %117 {strides = array<i32>} : memref<8x1xf32, #tpu.memory_space<vmem>>, vector<8x1xf32>,
        %c0_23 = arith.constant 0 : index
        %c0_24 = arith.constant 0 : index
        %119 = vector.load %arg10[%c0_23, %c0_24] : memref<8x1xf32, #tpu.memory_space<vmem>>, vector<8x1xf32>
        %120 = arith.addf %119, %103 : vector<8x1xf32>
        %c0_25 = arith.constant 0 : index
        %c0_26 = arith.constant 0 : index
        %121 = vector.load %arg10[%c0_25, %c0_26] : memref<8x1xf32, #tpu.memory_space<vmem>>, vector<8x1xf32>
        tpu.vector_store %arg10[%c0_25, %c0_26], %120 {strides = array<i32>} : memref<8x1xf32, #tpu.memory_space<vmem>>, vector<8x1xf32>,
      } else {
      }
      %c0_15 = arith.constant 0 : index
      %c0_16 = arith.constant 0 : index
      %110 = vector.load %arg4[%c0_15, %c0_16] : memref<8x1xf32, #tpu.memory_space<vmem>>, vector<8x1xf32>
      %111 = vector.shape_cast %110 : vector<8x1xf32> to vector<1x8x1xf32>
      %112 = vector.broadcast %111 : vector<1x8x1xf32> to vector<1x8x16xf32>
      %113 = arith.addf %96, %112 : vector<1x8x16xf32>
      %114 = arith.index_cast %0 : i32 to index
      %c0_17 = arith.constant 0 : index
      %c0_18 = arith.constant 0 : index
      %115 = vector.load %arg8[%114, %c0_17, %c0_18] : memref<2x8x16xf32, #tpu.memory_space<vmem>>, vector<1x8x16xf32>
      tpu.vector_store %arg8[%114, %c0_17, %c0_18], %113 {strides = array<i32>} : memref<2x8x16xf32, #tpu.memory_space<vmem>>, vector<1x8x16xf32>,
    } else {
    }
    %c1_i32_1 = arith.constant 1 : i32
    %4 = arith.cmpi eq, %arg0, %c1_i32_1 : i32
    %5 = arith.extui %4 : i1 to i32
    %c0_i32_2 = arith.constant 0 : i32
    %6 = arith.cmpi ne, %5, %c0_i32_2 : i32
    scf.if %6 {
      %c0_i32_3 = arith.constant 0 : i32
      %7 = arith.cmpi eq, %arg1, %c0_i32_3 : i32
      %8 = arith.extui %7 : i1 to i32
      %c0_i32_4 = arith.constant 0 : i32
      %9 = arith.cmpi ne, %8, %c0_i32_4 : i32
      scf.if %9 {
        %c0_13 = arith.constant 0 : index
        %c0_14 = arith.constant 0 : index
        %21 = vector.load %arg9[%c0_13, %c0_14] : memref<8x1xf32, #tpu.memory_space<vmem>>, vector<8x1xf32>
        %cst = arith.constant 3.125000e-02 : f32
        %22 = vector.broadcast %cst : f32 to vector<8x1xf32>
        %23 = arith.mulf %21, %22 : vector<8x1xf32>
        %c0_15 = arith.constant 0 : index
        %c0_16 = arith.constant 0 : index
        %24 = vector.load %arg10[%c0_15, %c0_16] : memref<8x1xf32, #tpu.memory_space<vmem>>, vector<8x1xf32>
        %cst_17 = arith.constant 3.125000e-02 : f32
        %25 = vector.broadcast %cst_17 : f32 to vector<8x1xf32>
        %26 = arith.mulf %24, %25 : vector<8x1xf32>
        %27 = arith.mulf %23, %23 : vector<8x1xf32>
        %28 = arith.subf %26, %27 : vector<8x1xf32>
        %c0_18 = arith.constant 0 : index
        %c0_19 = arith.constant 0 : index
        %29 = vector.load %arg5[%c0_18, %c0_19] : memref<8x1xf32, #tpu.memory_space<vmem>>, vector<8x1xf32>
        %cst_20 = arith.constant 9.99999974E-6 : f32
        %30 = vector.broadcast %cst_20 : f32 to vector<8x1xf32>
        %31 = arith.addf %28, %30 : vector<8x1xf32>
        %32 = math.rsqrt %31 : vector<8x1xf32>
        %33 = arith.mulf %29, %32 : vector<8x1xf32>
        %c0_21 = arith.constant 0 : index
        %c0_22 = arith.constant 0 : index
        %34 = vector.load %arg11[%c0_21, %c0_22] : memref<8x1xf32, #tpu.memory_space<vmem>>, vector<8x1xf32>
        tpu.vector_store %arg11[%c0_21, %c0_22], %33 {strides = array<i32>} : memref<8x1xf32, #tpu.memory_space<vmem>>, vector<8x1xf32>,
        %c0_23 = arith.constant 0 : index
        %c0_24 = arith.constant 0 : index
        %35 = vector.load %arg6[%c0_23, %c0_24] : memref<8x1xf32, #tpu.memory_space<vmem>>, vector<8x1xf32>
        %c0_25 = arith.constant 0 : index
        %c0_26 = arith.constant 0 : index
        %36 = vector.load %arg4[%c0_25, %c0_26] : memref<8x1xf32, #tpu.memory_space<vmem>>, vector<8x1xf32>
        %37 = arith.addf %23, %36 : vector<8x1xf32>
        %38 = arith.mulf %37, %33 : vector<8x1xf32>
        %39 = arith.subf %35, %38 : vector<8x1xf32>
        %c0_27 = arith.constant 0 : index
        %c0_28 = arith.constant 0 : index
        %40 = vector.load %arg12[%c0_27, %c0_28] : memref<8x1xf32, #tpu.memory_space<vmem>>, vector<8x1xf32>
        tpu.vector_store %arg12[%c0_27, %c0_28], %39 {strides = array<i32>} : memref<8x1xf32, #tpu.memory_space<vmem>>, vector<8x1xf32>,
      } else {
      }
      %10 = arith.index_cast %0 : i32 to index
      %c0 = arith.constant 0 : index
      %c0_5 = arith.constant 0 : index
      %11 = vector.load %arg8[%10, %c0, %c0_5] : memref<2x8x16xf32, #tpu.memory_space<vmem>>, vector<1x8x16xf32>
      %c0_6 = arith.constant 0 : index
      %c0_7 = arith.constant 0 : index
      %12 = vector.load %arg11[%c0_6, %c0_7] : memref<8x1xf32, #tpu.memory_space<vmem>>, vector<8x1xf32>
      %13 = vector.shape_cast %12 : vector<8x1xf32> to vector<1x8x1xf32>
      %14 = vector.broadcast %13 : vector<1x8x1xf32> to vector<1x8x16xf32>
      %15 = arith.mulf %11, %14 : vector<1x8x16xf32>
      %c0_8 = arith.constant 0 : index
      %c0_9 = arith.constant 0 : index
      %16 = vector.load %arg12[%c0_8, %c0_9] : memref<8x1xf32, #tpu.memory_space<vmem>>, vector<8x1xf32>
      %17 = vector.shape_cast %16 : vector<8x1xf32> to vector<1x8x1xf32>
      %18 = vector.broadcast %17 : vector<1x8x1xf32> to vector<1x8x16xf32>
      %19 = arith.addf %15, %18 : vector<1x8x16xf32>
      %c0_10 = arith.constant 0 : index
      %c0_11 = arith.constant 0 : index
      %c0_12 = arith.constant 0 : index
      %20 = vector.load %arg7[%c0_10, %c0_11, %c0_12] : memref<1x8x16xf32, #tpu.memory_space<vmem>>, vector<1x8x16xf32>
      tpu.vector_store %arg7[%c0_10, %c0_11, %c0_12], %19 {strides = array<i32>} : memref<1x8x16xf32, #tpu.memory_space<vmem>>, vector<1x8x16xf32>,
    } else {
    }
    return
  }
  func.func @transform_0(%arg0: i32, %arg1: i32) -> (i32, i32, i32) {
    %c1_i32 = arith.constant 1 : i32
    %0 = arith.subi %c1_i32, %arg0 : i32
    %1 = arith.muli %0, %arg1 : i32
    %c0_i32 = arith.constant 0 : i32
    %c0_i32_0 = arith.constant 0 : i32
    %c0_i32_1 = arith.constant 0 : i32
    return %1, %c0_i32, %c0_i32_0 : i32, i32, i32
  }
  func.func @transform_1(%arg0: i32, %arg1: i32) -> (i32, i32) {
    %c0_i32 = arith.constant 0 : i32
    %c0_i32_0 = arith.constant 0 : i32
    %c0_i32_1 = arith.constant 0 : i32
    return %c0_i32, %c0_i32_0 : i32, i32
  }
  func.func @transform_2(%arg0: i32, %arg1: i32) -> (i32, i32) {
    %c0_i32 = arith.constant 0 : i32
    %c0_i32_0 = arith.constant 0 : i32
    %c0_i32_1 = arith.constant 0 : i32
    return %c0_i32, %c0_i32_0 : i32, i32
  }
  func.func @transform_3(%arg0: i32, %arg1: i32) -> (i32, i32) {
    %c0_i32 = arith.constant 0 : i32
    %c0_i32_0 = arith.constant 0 : i32
    %c0_i32_1 = arith.constant 0 : i32
    return %c0_i32, %c0_i32_0 : i32, i32
  }
  func.func @transform_4(%arg0: i32, %arg1: i32) -> (i32, i32) {
    %c0_i32 = arith.constant 0 : i32
    %c0_i32_0 = arith.constant 0 : i32
    %c0_i32_1 = arith.constant 0 : i32
    return %c0_i32, %c0_i32_0 : i32, i32
  }
  func.func @transform_5(%arg0: i32, %arg1: i32) -> (i32, i32, i32) {
    %0 = arith.muli %arg0, %arg1 : i32
    %c0_i32 = arith.constant 0 : i32
    %c0_i32_0 = arith.constant 0 : i32
    %c0_i32_1 = arith.constant 0 : i32
    return %0, %c0_i32, %c0_i32_0 : i32, i32, i32
  }
}

</mosaic_0001>

<bundles_post_ra>
// kernel: sampadding_conv1d_bn.1
= control target key start
LH: loop header
LB: loop body
LE: loop exit
PB: predicated region body
PF: predicated region fallthrough
CT: control target
= control target key end

     0   :  { %10 = vsyncpa [#allocation8], 0  ;;  %s980_s0 = inlined_call_operand.vmem [shape: f32[2,4,24], index: 0, kind: input, shape index: {}]   ;;  %s981_s1 = inlined_call_operand.vmem [shape: f32[8,12], index: 1, kind: input, shape index: {}]   ;;  %s982_s2 = inlined_call_operand.vmem [shape: f32[8,1], index: 2, kind: input, shape index: {}]   ;;  %s983_s3 = inlined_call_operand.vmem [shape: f32[8,1], index: 3, kind: input, shape index: {}]   ;;  %s984_s4 = inlined_call_operand.vmem [shape: f32[8,1], index: 4, kind: input, shape index: {}]   ;;  %s985_s5 = inlined_call_operand.hbm [shape: f32[2,8,16], index: 5, kind: output, shape index: {}]  }
   0x1   :  { %12 = vsyncpa [#allocation8 + $0x1], 0  ;;  %s811_s18 = smov 0   ;;  %s813_s19 = smov 0  }
   0x2   :  { %s815_s20 = smov 0   ;;  %s817_s21 = smov 0  }
   0x3   :  { %s819_s22 = smov 0   ;;  %s821_s23 = smov 0  }
   0x4   :  { %s823_s24 = smov 0   ;;  %s825_s25 = smov 0  }
   0x5 LB: > { %s548_s26 = sadd.s32 4294967295, %s763_s25   ;;  %s549_s27 = sadd.s32 4294967294, %s763_s25   ;;  %s763_s25 = sphi %s825_s25, %s18_s25   ;;  %s759_s24 = sphi %s823_s24, %s994_s24   ;;  %s755_s23 = sphi %s821_s23, %s993_s23   ;;  %s751_s22 = sphi %s819_s22, %s992_s22   ;;  %s747_s21 = sphi %s817_s21, %s991_s21   ;;  %s743_s20 = sphi %s815_s20, %s990_s20   ;;  %s739_s19 = sphi %s813_s19, %s989_s19   ;;  %s735_s18 = sphi %s811_s18, %s988_s18  }
   0x6   : > { %s27_s28 = sadd.s32 1, %s755_s23  ;;  %s30_s29 = sadd.s32 1, %s759_s24 }
   0x7   : > { %p28_p0 = scmp.ge.s32.totalorder %s27_s28, 2  ;;  %s148_s30 = smul.u32 %s755_s23, %s759_s24 }
   0x8   : > { %p163_p1 = scmp.ne.s32.totalorder %s743_s20, %s739_s19  ;;  %p164_p2 = scmp.eq.s32.totalorder %s548_s26, 3 }
   0x9   : > { %s996_s28 = smov (%p28_p0, %s27_s28), 0  ;;  %s998_s29 = smov (!%p28_p0, %s30_s29), %s759_s24 }
   0xa   : > { %p169_p3 = scmp.ne.s32.totalorder %s739_s19, %s735_s18  ;;  %p32_p4 = scmp.ge.s32.totalorder %s998_s29, 2 }
   0xb   : > { %p170_p5 = scmp.eq.s32.totalorder %s549_s27, 3  ;;  %p864_p6 = por %p164_p2, %p163_p1 }
   0xc   : > { %p552_p7 = scmp.ge.s32.totalorder %s763_s25, 1  ;;  %s1000_s29 = smov (%p32_p4, %s998_s29), 0 }
   0xd   : > { %p871_p8 = por %p170_p5, %p169_p3  ;;  %p211_p9 = scmp.lt.s32.totalorder %s763_s25, 5 }
   0xe   : > { %s149_s8 = smul.u32 %s1000_s29, %s996_s28  ;;  %s153_s10 = sadd.s32 1, %s743_s20 }
   0xf   : > { %p212_p10 = pnand %p552_p7, %p211_p9 }
  0x10   : > { %s150_s9 = ssub.s32 %s148_s30, %s149_s8  ;;  %s237_s12 = sand.u32 (!%p212_p10), 1, %s739_s19  }
  0x11   : > { %p151_p11 = scmp.eq.s32.totalorder %s150_s9, 0  ;;  %215 = sbr.rel (%p212_p10) target bundleno = 781 (0x30d), region = 40 }
  0x12   : > { %s240_s13 = ssub.s32 (!%p212_p10), 1, %s751_s22  ;;  %s886_s14 = sshll.u32 (!%p212_p10), %s237_s12, 3 }
  0x13   : > { %s880_s11 = scalar_select %p151_p11, %s743_s20, %s153_s10  }
  0x14   : > { %s241_s15 = smul.u32 (!%p212_p10), %s747_s21, %s240_s13  ;;  %s239_s30 = scalar_lea.vmem (!%p212_p10), [#allocation7], %s886_s14 }
  0x15   : > { %p555_p13 = scmp.ne.s32.totalorder (!%p212_p10), %s751_s22, 0 }
  0x16   : > { %p242_p12 = scmp.lt.s32.totalorder (!%p212_p10), %s241_s15, 1 }
  0x18   : > { %s1002_s15 = smov (!%p242_p12, %s241_s15), 1  ;;  %252 = sbr.rel (%p555_p13) target bundleno = 582 (0x246), region = 44 }
  0x19   : > { %s554_s16 = sshll.u32 %s1002_s15, 2  ;;  %v254_v0 = vld [vmem:[%s981_s1] sm:$0xff] (!%p555_p13)  ;;  %v765_v1 = vmov (!%p555_p13), 7   ;;  %v766_v2 = vmov (!%p555_p13), 1   ;;  %v767_v3 = vmov (!%p555_p13), 10   ;;  %v768_v4 = vmov (!%p555_p13), 4  }
  0x1a   : > { %s892_s27 = scalar_lea.vmem %s980_s0, %s554_s16  ;;  %654 = vset.pattern.permute.xlu1 (!%p555_p13), %v765_v1  ;;  %652 = vset.pattern.permute.xlu0 (!%p555_p13), %v766_v2  ;;  %v769_v5 = vmov (!%p555_p13), 2   ;;  %v770_v6 = vmov (!%p555_p13), 5   ;;  %v771_v7 = vmov (!%p555_p13), 8   ;;  %v772_v8 = vmov (!%p555_p13), 0   ;;  %s777_s10 = smov (!%p555_p13), 124  }
  0x1b   : > { %317 = vperm.xlu1 (!%p555_p13), %654, %v254_v0   ;;  %297 = vperm.xlu0 (!%p555_p13), %652, %v254_v0   ;;  %v773_v9 = vmov (!%p555_p13), 11   ;;  %v774_v10 = vmov (!%p555_p13), 9   ;;  %v775_v11 = vmov (!%p555_p13), 3   ;;  %v776_v12 = vmov (!%p555_p13), 6   ;;  %v253_v17 = vld [vmem:[%s892_s27] sm:$0xf] (!%p555_p13) }
  0x1c   : > { %v260_v13 = vlaneseq (!%p555_p13)  ;;  %s778_s13 = smov (!%p555_p13), 120   ;;  %vm376_vm0 = vcmask (!%p555_p13), 130048   ;;  %p556_p0 = scmp.ne.s32.totalorder (!%p555_p13), %s747_s21, 0 }
  0x1e   : > { %v261_v14 = vshrl.u32 (!%p555_p13), %v260_v13, 7 }
  0x1f   : > { %655 = vset.pattern.permute.xlu1 %v767_v3  ;;  %653 = vset.pattern.permute.xlu0 %v768_v4  ;;  %vm390_vm1 = vcmask (!%p556_p0), 7168  }
  0x20   : > { %327 = vperm.xlu1 %655, %v254_v0   ;;  %307 = vperm.xlu0 %653, %v254_v0   ;;  %v282_v15 = vsub.s32 2, %v261_v14  ;;  %v262_v16 = vsub.s32 0, %v261_v14  ;;  %v272_v20 = vsub.s32 1, %v261_v14  ;;  %v292_v25 = vsub.s32 3, %v261_v14 }
  0x22   : > { %v283_v18 = vrot.slane %v253_v17, %v282_v15  ;;  %v263_v19 = vrot.slane %v253_v17, %v262_v16  ;;  %v273_v26 = vrot.slane %v253_v17, %v272_v20  ;;  %v293_v29 = vrot.slane %v253_v17, %v292_v25 }
  0x24   : > { %656 = vset.pattern.permute.xlu1 %v769_v5  ;;  %657 = vset.pattern.permute.xlu0 %v770_v6 }
  0x25   : > { %337 = vperm.xlu1 %656, %v254_v0   ;;  %347 = vperm.xlu0 %657, %v254_v0  }
  0x29   : > { %658 = vset.pattern.permute.xlu1 %v771_v7  ;;  %660 = vset.pattern.permute.xlu0 %v772_v8 }
  0x2a   : > { %357 = vperm.xlu1 %658, %v254_v0   ;;  %257 = vperm.xlu0 %660, %v254_v0  }
  0x2e   : > { %659 = vset.pattern.permute.xlu1 %v773_v9  ;;  %663 = vset.pattern.permute.xlu0 %v774_v10 }
  0x2f   : > { %367 = vperm.xlu1 %659, %v254_v0   ;;  %287 = vperm.xlu0 %663, %v254_v0  }
  0x33   : > { %661 = vset.pattern.permute.xlu1 %v775_v11  ;;  %664 = vset.pattern.permute.xlu0 %v773_v9 }
  0x34   : > { %267 = vperm.xlu1 %661, %v254_v0  }
  0x38   : > { %662 = vset.pattern.permute.xlu1 %v776_v12 }
  0x39   : > { %277 = vperm.xlu1 %662, %v254_v0  }
  0x9a   : > { %v318_v21 = vpop.permute.xlu1 %317  ;;  %v298_v22 = vpop.permute.xlu0 %297 }
  0x9b   : > { %v320_v23 = vmul.f32 %v318_v21, %v283_v18  ;;  %v300_v24 = vmul.f32 %v298_v22, %v263_v19 }
  0x9d   : > { %322 = vrot.lane.b32.xlu0 %v320_v23, %s777_s10  ;;  %302 = vrot.lane.b32.xlu1 %v300_v24, %s777_s10 }
  0x9f   : > { %v328_v27 = vpop.permute.xlu1 %327  ;;  %v308_v28 = vpop.permute.xlu0 %307 }
  0xa0   : > { %v310_v30 = vmul.f32 %v308_v28, %v273_v26  ;;  %v330_v31 = vmul.f32 %v328_v27, %v293_v29 }
  0xa2   : > { %312 = vrot.lane.b32.xlu1 %v310_v30, %s777_s10 }
  0xa4   : > { %v338_v32 = vpop.permute.xlu1 %337  ;;  %v348_v33 = vpop.permute.xlu0 %347 }
  0xa5   : > { %v340_v34 = vmul.f32 %v338_v32, %v263_v19  ;;  %v350_v35 = vmul.f32 %v348_v33, %v273_v26 }
  0xa6   : > { %332 = vrot.lane.b32.xlu1 %v330_v31, %s777_s10 }
  0xa7   : > { %342 = vrot.lane.b32.xlu0 %v340_v34, %s778_s13 }
  0xa9   : > { %v358_v36 = vpop.permute.xlu1 %357  ;;  %v258_v40 = vpop.permute.xlu0 %257 }
  0xaa   : > { %v360_v37 = vmul.f32 %v358_v36, %v283_v18  ;;  %352 = vrot.lane.b32.xlu1 %v350_v35, %s778_s13  ;;  %v264_v41 = vmul.f32 %v263_v19, %v258_v40 }
  0xac   : > { %362 = vrot.lane.b32.xlu0 %v360_v37, %s778_s13 }
  0xae   : > { %v368_v38 = vpop.permute.xlu1 %367  ;;  %v288_v45 = vpop.permute.xlu0 %287 }
  0xaf   : > { %v370_v39 = vmul.f32 %v368_v38, %v293_v29  ;;  %v294_v47 = vmul.f32 %v293_v29, %v288_v45 }
  0xb1   : > { %372 = vrot.lane.b32.xlu1 %v370_v39, %s778_s13 }
  0xb3   : > { %v268_v42 = vpop.permute.xlu1 %267 }
  0xb4   : > { %v274_v43 = vmul.f32 %v273_v26, %v268_v42 }
  0xb6   : > { %v275_v44 = vadd.f32 %v274_v43, %v264_v41 }
  0xb8   : > { %v278_v46 = vpop.permute.xlu1 %277 }
  0xb9   : > { %v284_v48 = vmul.f32 %v283_v18, %v278_v46 }
  0xbb   : > { %v285_v49 = vadd.f32 %v284_v48, %v275_v44 }
  0xbd   : > { %v295_v50 = vadd.f32 %v294_v47, %v285_v49 }
 0x10f   : > { %v303_v51 = vpop.permute.xlu1 %302  ;;  %v323_v54 = vpop.permute.xlu0 %322 }
 0x110   : > { %v305_v52 = vadd.f32 %v303_v51, %v295_v50 }
 0x114   : > { %v313_v53 = vpop.permute.xlu1 %312 }
 0x115   : > { %v315_v55 = vadd.f32 %v313_v53, %v305_v52 }
 0x117   : > { %v325_v56 = vadd.f32 %v323_v54, %v315_v55 }
 0x118   : > { %v333_v57 = vpop.permute.xlu1 %332 }
 0x119   : > { %v335_v58 = vadd.f32 %v333_v57, %v325_v56  ;;  %v343_v59 = vpop.permute.xlu0 %342 }
 0x11b   : > { %v345_v60 = vadd.f32 %v343_v59, %v335_v58 }
 0x11c   : > { %v353_v61 = vpop.permute.xlu1 %352 }
 0x11d   : > { %v355_v62 = vadd.f32 %v353_v61, %v345_v60 }
 0x11e   : > { %v363_v63 = vpop.permute.xlu0 %362 }
 0x11f   : > { %v365_v0 = vadd.f32 %v363_v63, %v355_v62 }
 0x123   : > { %v373_v1 = vpop.permute.xlu1 %372 }
 0x124   : > { %v375_v2 = vadd.f32 %v373_v1, %v365_v0 }
 0x126   : > { %v377_v3 = vsel %vm376_vm0, %v375_v2, 0.0  ;;  %v381_v4 = vmul.f32 %v375_v2, %v375_v2 }
 0x127   : > { %378 = vadd.xlane.f32.xlu0 %v377_v3 }
 0x128   : > { %v382_v5 = vsel %vm376_vm0, %v381_v4, 0.0 }
 0x129   : > { %383 = vadd.xlane.f32.xlu1 %v382_v5 }
 0x1b0   : > { %389 = sbr.rel (%p556_p0) target bundleno = 440 (0x1b8), region = 48 }
 0x1b4   : > { %v379_v6 = vpop.xlane.xlu0 %378 }
 0x1b5   : > { %391 = vst.msk [vmem:[#allocation3] sm:$0xff] (!%p556_p0), %vm390_vm1, %v379_v6 }
 0x1b6   : > { %v384_v7 = vpop.xlane.xlu1 %383 }
 0x1b7   : > { %392 = vst.msk [vmem:[#allocation4] sm:$0xff] %vm390_vm1, %v384_v7 }
 0x1b8 PF: > { %p557_p1 = scmp.le.s32.totalorder %s747_s21, 0 }
 0x1b9   : > { %vm399_vm2 = vcmask (!%p557_p1), 7168  }
 0x1ba   : > { %396 = sbr.rel (%p557_p1) target bundleno = 450 (0x1c2), region = 52 }
 0x1bd   : > { %v397_v9 = vld [vmem:[#allocation3] sm:$0xff] (!%p557_p1) }
 0x1be   : > { %v401_v10 = vld [vmem:[#allocation4] sm:$0xff] (!%p557_p1)  ;;  %v398_v11 = vadd.f32 (!%p557_p1), %v397_v9, %v379_v6 }
 0x1bf   : > { %v402_v12 = vadd.f32 (!%p557_p1), %v401_v10, %v384_v7 }
 0x1c0   : > { %400 = vst.msk [vmem:[#allocation3] sm:$0xff] (!%p557_p1), %vm399_vm2, %v398_v11 }
 0x1c1   : > { %403 = vst.msk [vmem:[#allocation4] sm:$0xff] %vm399_vm2, %v402_v12 }
 0x1c2 PF: > { %665 = vset.pattern.permute.xlu0 %v772_v8  ;;  %v404_v13 = vld [vmem:[%s982_s2] sm:$0xff]  ;;  %s558_s17 = sshll.u32 %s747_s21, 3 }
 0x1c3   : > { %407 = vperm.xlu0 %665, %v404_v13   ;;  %s412_s26 = scalar_lea.vmem [#allocation2], %s558_s17 }
 0x242   : > { %v408_v14 = vpop.permute.xlu0 %407 }
 0x243   : > { %v410_v15 = vadd.f32 %v408_v14, %v375_v2 }
 0x245   : > { %413 = vst.msk [vmem:[%s412_s26] sm:$0xff] %vm376_vm0, %v410_v15 }
 0x246 PF: > { %p559_p2 = scmp.ne.s32.totalorder %s751_s22, 1 }
 0x247   : > { %p560_p3 = scmp.ne.s32.totalorder (!%p559_p2), %s747_s21, 0 }
 0x248   : > { %417 = sbr.rel (%p559_p2) target bundleno = 756 (0x2f4), region = 56 }
 0x24f   : > { %421 = sbr.rel (%p560_p3) target bundleno = 618 (0x26a), region = 60  ;;  %v422_v16 = vld [vmem:[#allocation3] sm:$0xff] (!%p560_p3)  ;;  %v424_v8 = vld [vmem:[#allocation4] sm:$0xff] (!%p560_p3)  ;;  %v435_v22 = vld [vmem:[%s982_s2] sm:$0xff] (!%p560_p3)  ;;  %vm432_vm3 = vcmask (!%p560_p3), 7168  }
 0x250   : > { %v423_v17 = vmul.f32 (!%p560_p3), 0.03125, %v422_v16  ;;  %v425_v18 = vmul.f32 (!%p560_p3), 0.03125, %v424_v8  ;;  %v428_v23 = vld [vmem:[%s983_s3] sm:$0xff] (!%p560_p3) }
 0x251   : > { %v434_v27 = vld [vmem:[%s984_s4] sm:$0xff] (!%p560_p3) }
 0x252   : > { %v426_v19 = vmul.f32 (!%p560_p3), %v423_v17, %v423_v17  ;;  %v436_v24 = vadd.f32 (!%p560_p3), %v435_v22, %v423_v17 }
 0x254   : > { %v427_v20 = vsub.f32 (!%p560_p3), %v425_v18, %v426_v19 }
 0x256   : > { %v429_v21 = vadd.f32 1e-05, %v427_v20 }
 0x258   : > { %666 = vrsqrt.f32 %v429_v21 }
 0x262   : > { %v667_v25 = vpop.eup %666 }
 0x263   : > { %v431_v26 = vmul.f32 %v667_v25, %v428_v23 }
 0x265   : > { %433 = vst.msk [vmem:[#allocation5] sm:$0xff] %vm432_vm3, %v431_v26  ;;  %v437_v28 = vmul.f32 %v436_v24, %v431_v26 }
 0x267   : > { %v438_v29 = vsub.f32 %v434_v27, %v437_v28 }
 0x269   : > { %439 = vst.msk [vmem:[#allocation6] sm:$0xff] %vm432_vm3, %v438_v29 }
 0x26a PF: > { %v779_v31 = vmov 0   ;;  %s561_s16 = sshll.u32 %s747_s21, 3  ;;  %vm457_vm4 = vcmask 130048  }
 0x26b   : > { %668 = vset.pattern.permute.xlu0 %v779_v31  ;;  %s441_s17 = scalar_lea.vmem [#allocation2], %s561_s16 }
 0x26c   : > { %v443_v30 = vld [vmem:[#allocation5] sm:$0xff] }
 0x26d   : > { %446 = vperm.xlu0 %668, %v443_v30   ;;  %v442_v34 = vld [vmem:[%s441_s17] sm:$0xff] }
 0x270   : > { %v450_v32 = vld [vmem:[#allocation6] sm:$0xff] }
 0x271   : > { %453 = vperm.xlu0 %668, %v450_v32  }
 0x2ec   : > { %v447_v33 = vpop.permute.xlu0 %446 }
 0x2ed   : > { %v449_v35 = vmul.f32 %v447_v33, %v442_v34 }
 0x2f0   : > { %v454_v36 = vpop.permute.xlu0 %453 }
 0x2f1   : > { %v456_v37 = vadd.f32 %v454_v36, %v449_v35 }
 0x2f3   : > { %458 = vst.msk [vmem:[%s239_s30] sm:$0xff] %vm457_vm4, %v456_v37 }
 0x2f4 PF: > { %s467_s26 = smul.u32 %s747_s21, %s751_s22  ;;  %s474_s27 = sshll.u32 %s239_s30, 4  ;;  %s929_s27 = int_to_ptr.vmem [resolvable:$true] %s474_s27 }
 0x2f5   : > { %s460_s15 = scalar_lea.sflag [#allocation8], %s237_s12  ;;  %s669_s16 = scalar_lea.vmem %s929_s27, 128 }
 0x2f6   : > { %s563_s8 = sshll.u32 %s467_s26, 7  ;;  %p670_p4 = scmp.ne.s32.totalorder %s929_s27, %s669_s16 }
 0x2f7   : > { %s472_s13 = scalar_lea.hbm %s985_s5, %s563_s8  ;;  %s780_s21 = smov [#allocation7]  }
 0x2f8   : > { %p671_p5 = pnand %p670_p4, %p864_p6  ;;  %s673_s22 = sshll.u32 %s780_s21, 4  ;;  %s674_s22 = int_to_ptr.vmem [resolvable:$false] %s673_s22 }
 0x2f9   : > { %s675_s14 = scalar_lea.vmem %s674_s22, 256  ;;  %p676_p9 = scmp.lt.s32.totalorder %s929_s27, %s674_s22 }
 0x2fa   : > { %p672_p7 = pneg %p671_p5  ;;  %p677_p10 = scmp.lt.s32.totalorder %s675_s14, %s669_s16 }
 0x2fc   : > { %p678_p11 = por %p677_p10, %p676_p9 }
 0x2fe   : > { %p679_p12 = pnand %p678_p11, %p672_p7 }
 0x300   : > { %682 = shalt.err (!%p679_p12)
}
 0x301   : > { %s683_s30 = scalar_lea.hbm %s472_s13, 128  ;;  %s687_s26 = scalar_lea.hbm %s985_s5, 256 }
 0x302   : > { %p684_p13 = scmp.ne.s32.totalorder %s472_s13, %s683_s30  ;;  %p688_p2 = scmp.lt.u32.totalorder %s472_s13, %s985_s5 }
 0x303   : > { %p689_p3 = scmp.lt.u32.totalorder %s687_s26, %s683_s30  ;;  %p691_p5 = scmp.lt.u32.totalorder %s683_s30, %s472_s13 }
 0x304   : > { %p685_p0 = pnand %p684_p13, %p864_p6 }
 0x305   : > { %p690_p4 = por %p689_p3, %p688_p2 }
 0x306   : > { %p686_p1 = pneg %p685_p0 }
 0x307   : > { %p692_p9 = por %p691_p5, %p690_p4 }
 0x309   : > { %p693_p7 = pnand %p692_p9, %p686_p1 }
 0x30b   : > { %696 = shalt.err (!%p693_p7)
}
 0x30c   : > { %566 = dma.vmem_to_hbm [thread:$0]  (%p864_p6), %s929_s27, 128, %s472_s13, %s460_s15  }
 0x30d PF: > { %p572_p10 = scmp.ge.s32.totalorder %s763_s25, 2  ;;  %s486_s10 = sand.u32 1, %s735_s18  }
 0x30e   : > { %s487_s16 = scalar_lea.sflag [#allocation8], %s486_s10 }
 0x30f   : > { %p569_p11 = pnand %p572_p10, %p871_p8 }
 0x311   : > { %730 = dma.done.wait (!%p569_p11), %s487_s16, 128  }
 0x312   : > { %732 = vsyncadd (!%p569_p11), %s487_s16, 4294967168  ;;  %s18_s25 = sadd.s32 1, %s763_s25   ;;  %s988_s18 = smov %s739_s19 }
 0x313   : > { %p15_p12 = scmp.ge.s32.totalorder %s18_s25, 6   ;;  %s989_s19 = smov %s743_s20 }
 0x314   : > { %s990_s20 = smov %s880_s11  ;;  %s991_s21 = smov %s755_s23 }
 0x315   : > { %s992_s22 = smov %s759_s24  ;;  %s993_s23 = smov %s996_s28 }
 0x316   : > { %s994_s24 = smov %s1000_s29  ;;  %17 = sbr.rel (!%p15_p12) target bundleno = 5 (0x5), region = 97 }
 0x31d   :  { %492 = vsyncpa [#allocation8], 1 }
 0x31e   :  { %494 = vsyncpa [#allocation8 + $0x1], 1 }

</bundles_post_ra>
